<compile_context>
chip_gen: v5e
topology: v5e:2x2
jax: 0.10.0
libtpu: 0.0.40
codegen_flags: <defaults>
</compile_context>

<pallas_src>
from functools import partial

import jax
import jax.numpy as jnp
from jax.experimental import pallas as pl
from jax.experimental.pallas import tpu as pltpu


# ----------------------------------------------------------------------------
# Kernel
# ----------------------------------------------------------------------------
def weighted_aggregate_kernel(pooled_ref, wbb_ref, bbb_ref, w_ref,
                              out_ref, attn_ref):
    """One batch tile of WeightedAggregate.forward (backbone linear fused).

    pooled_ref : (V, TB, C)   f32   per-view globally-pooled backbone features
    wbb_ref    : (C, F)       f32   synthetic backbone linear weight (resident)
    bbb_ref    : (1, F)       f32   synthetic backbone linear bias  (resident)
    w_ref      : (F, F)       bf16  self.attention_weights          (resident)
    out_ref    : (TB, F)      f32   aggregated output
    attn_ref   : (TB, LANES)  f32   final_attention_weights, lane-padded
    """
    V, TB, C = pooled_ref.shape
    F = w_ref.shape[-1]

    wbb = wbb_ref[...]                       # (C, F)  f32   (hoisted loads)
    bbb = bbb_ref[...]                       # (1, F)  f32
    w = w_ref[...]                           # (F, F)  bf16

    # Per-view dense (TB, F) slabs.  V is tiny and static, so a Python loop
    # keeps every slab lane/sublane dense with zero reshapes.
    aux = []                                 # f32, aux (kept for weighted sum)
    am = []                                  # f32, aux @ attention_weights
    for v in range(V):
        a_v = jnp.dot(pooled_ref[v], wbb,
                      preferred_element_type=jnp.float32) + bbb      # (TB, F)
        aux.append(a_v)
        am.append(jnp.dot(a_v.astype(jnp.bfloat16), w,
                          preferred_element_type=jnp.float32))       # (TB, F)

    # Gram column sums on VPU/XLU (keep the MXU free).  Symmetry:
    # prod[b,i,j] == prod[b,j,i], so only the upper triangle is computed and
    # each off-diagonal relu term feeds both colsum[i] and colsum[j].
    #   colsum[b, j] = sum_i relu( <am[b,i,:], am[b,j,:]> )
    colsum = [jnp.zeros((TB, 1), jnp.float32) for _ in range(V)]
    for i in range(V):
        for j in range(i, V):
            r = jnp.maximum(
                jnp.sum(am[i] * am[j], axis=-1, keepdims=True), 0.0)  # (TB, 1)
            colsum[j] = colsum[j] + r
            if i != j:
                colsum[i] = colsum[i] + r

    # attn[b, j] = colsum[b, j] / sum_j colsum[b, j]   (reciprocal on the EUP;
    # epsilon guards the approximate reciprocal against a ~zero denominator).
    denom = colsum[0]
    for j in range(1, V):
        denom = denom + colsum[j]
    inv = pl.reciprocal(denom + 1e-12, approx=True)                   # (TB, 1)

    # output[b, :] = sum_v aux[b, v, :] * attn[b, v]
    out = jnp.zeros((TB, F), jnp.float32)
    attn_cols = []
    for v in range(V):
        a_v = colsum[v] * inv                                         # (TB, 1)
        attn_cols.append(a_v)
        out = out + aux[v] * a_v
    out_ref[...] = out

    # Lane-dense attn store: pad the V columns out to the full lane width so
    # the store is an unmasked vst (wrapper slices [:, :V]).
    pad = attn_ref.shape[-1] - V
    if pad > 0:
        attn_cols.append(jnp.zeros((TB, pad), jnp.float32))
    attn_ref[...] = jnp.concatenate(attn_cols, axis=1)


# ----------------------------------------------------------------------------
# Helpers / wrapper
# ----------------------------------------------------------------------------
def _round_up(x, m):
    return ((x + m - 1) // m) * m


def _pick_block_b(B, V, F):
    """Batch tile tb with B % tb == 0 and (tb == B or tb % 8 == 0).

    Targets ~2 MiB of f32 aux rows per grid step (tb*V rows of F lanes) so the
    ~0.35us per-grid-step overhead is amortized and DMAs are full-size, while
    keeping the grid length >= 2 whenever B allows (v7x megacore) and the
    per-step footprint far below v7x's 64 MiB VMEM."""
    target_rows = max(8 * V, (2 << 20) // (F * 4))     # rows of (rows, F) f32
    tb_target = max(8, target_rows // max(V, 1))
    if B >= 16:
        tb_target = min(tb_target, B // 2)             # keep grid >= 2
    tb_target = min(tb_target, B)
    for tb in range(tb_target, 0, -1):
        if B % tb == 0 and (tb == B or tb % 8 == 0):
            return tb
    return B


@partial(jax.jit, static_argnames=("tb",))
def weighted_aggregate(mvimages, attn_w, w_bb, b_bb, tb=None):
    """mvimages: (B, V, C, H, W).  Returns (output (B, F), attn (B, V))."""
    B, V, C, H, W_sp = mvimages.shape
    F = attn_w.shape[0]

    # Stand-in backbone trunk: global average pool per view (NCHW).
    # TODO(synk): real HRNet backbone not implemented; its pooled-feature
    # linear head IS implemented and fused into the kernel below.
    pooled = jnp.mean(mvimages, axis=(3, 4))            # (B, V, C)
    pooled = jnp.transpose(pooled, (1, 0, 2))           # (V, B, C) dense slabs

    if tb is None:
        tb = _pick_block_b(B, V, F)
    if B % tb != 0 or (tb != B and tb % 8 != 0):
        raise ValueError(f"invalid batch tile tb={tb} for B={B}")
    grid = (B // tb,)

    attn_lanes = max(128, _round_up(V, 128))            # lane-dense attn block

    w_bf16 = attn_w.astype(jnp.bfloat16)                # halves W DMA bytes
    w_bb2 = w_bb.astype(jnp.float32)                    # (C, F)
    b_bb2 = b_bb.reshape(1, F).astype(jnp.float32)      # (1, F)

    # VMEM limit from the actual (padded) block sizes.
    lanes_c = _round_up(C, 128)
    lanes_f = _round_up(F, 128)
    sub_tb = _round_up(tb, 8)
    pooled_blk = V * sub_tb * lanes_c * 4
    out_blk = sub_tb * lanes_f * 4
    attn_blk = sub_tb * attn_lanes * 4
    wbb_blk = _round_up(C, 8) * lanes_f * 4
    bbb_blk = 8 * lanes_f * 4
    w_blk = _round_up(F, 16) * lanes_f * 2
    temps = 2 * V * sub_tb * lanes_f * 4                # aux_v + am_v slabs
    vmem_bytes = (2 * (pooled_blk + out_blk + attn_blk)  # double-buffered blocks
                  + 2 * (wbb_blk + bbb_blk + w_blk)      # resident weights
                  + temps)
    vmem_limit = int(min(max(2 * vmem_bytes, 16 << 20), 48 << 20))

    cost = pl.CostEstimate(
        flops=(2 * B * V * C * F                 # fused backbone linear
               + 2 * B * V * F * F               # aux @ attention_weights
               + 2 * B * (V * (V + 1) // 2) * F  # Gram (upper triangle)
               + 3 * B * V * F),                 # weighted sum + scaling
        transcendentals=B,
        bytes_accessed=(B * V * C * 4 + C * F * 4 + F * 4 + F * F * 2
                        + B * F * 4 + B * attn_lanes * 4),
    )

    out, attn_padded = pl.pallas_call(
        weighted_aggregate_kernel,
        out_shape=(jax.ShapeDtypeStruct((B, F), jnp.float32),
                   jax.ShapeDtypeStruct((B, attn_lanes), jnp.float32)),
        grid=grid,
        in_specs=[
            pl.BlockSpec((V, tb, C), lambda i: (0, i, 0)),   # pooled batch tile
            pl.BlockSpec((C, F), lambda i: (0, 0)),          # w_bb, resident
            pl.BlockSpec((1, F), lambda i: (0, 0)),          # b_bb, resident
            pl.BlockSpec((F, F), lambda i: (0, 0)),          # attention W, resident
        ],
        out_specs=(
            pl.BlockSpec((tb, F), lambda i: (i, 0)),
            pl.BlockSpec((tb, attn_lanes), lambda i: (i, 0)),
        ),
        compiler_params=pltpu.CompilerParams(
            dimension_semantics=("parallel",),
            vmem_limit_bytes=vmem_limit,
        ),
        cost_estimate=cost,
    )(pooled, w_bb2, b_bb2, w_bf16)

    attn = attn_padded[:, :V]
    # torch does output.view(B, -1).squeeze(); with B > 1, F > 1 it is a no-op.
    return out, attn


# ----------------------------------------------------------------------------
# Pure-JAX references
# ----------------------------------------------------------------------------
def _reference(mvimages, attn_w, w_bb, b_bb, *, bf16_matmul):
    """Reference of the same forward pass.  bf16_matmul=True mirrors the
    kernel's mixed-precision aux@W; False is the pure-f32 module semantics."""
    pooled = jnp.mean(mvimages, axis=(3, 4))                             # (B, V, C)
    aux = jnp.einsum('bvc,cf->bvf', pooled, w_bb,
                     preferred_element_type=jnp.float32) + b_bb          # (B, V, F)
    if bf16_matmul:
        am = jnp.einsum('bvf,fg->bvg',
                        aux.astype(jnp.bfloat16), attn_w.astype(jnp.bfloat16),
                        preferred_element_type=jnp.float32)
    else:
        am = jnp.einsum('bvf,fg->bvg', aux, attn_w,
                        preferred_element_type=jnp.float32)
    prod = jnp.einsum('bvg,bug->bvu', am, am, preferred_element_type=jnp.float32)
    relu_res = jnp.maximum(prod, 0.0)
    denom = jnp.sum(relu_res, axis=(1, 2), keepdims=True)
    attn = jnp.sum(relu_res / denom, axis=1)                             # (B, V)
    out = jnp.sum(aux * attn[..., None], axis=1)                         # (B, F)
    return out, attn


# ----------------------------------------------------------------------------
# Demo / self-test
# ----------------------------------------------------------------------------
if __name__ == "__main__":
    # Small, shape-consistent example: B=16 batches, V=4 views, NCHW 4x8x8,
    # feat_dim F=128 (lane-aligned).
    B, V, C, H, W_sp, F = 16, 4, 4, 8, 8, 128

    key = jax.random.PRNGKey(0)
    k_img, k_attn, k_wbb, k_bbb = jax.random.split(key, 4)

    mvimages = jax.random.normal(k_img, (B, V, C, H, W_sp), jnp.float32)

    # nn.Parameter((r1 - r2) * rand(F, F) + r2) with r1=-1, r2=1 => U(-1, 1)
    attention_weights = jax.random.uniform(
        k_attn, (F, F), jnp.float32, minval=-1.0, maxval=1.0)

    # deterministic synthetic backbone params (stand-in for `model`)
    w_bb = 0.5 * jax.random.normal(k_wbb, (C, F), jnp.float32)
    b_bb = 0.1 * jax.random.normal(k_bbb, (F,), jnp.float32)

    # Auto tile path (tb=8 here -> grid of 2, exercises the pipeline + megacore split).
    out, attn = weighted_aggregate(mvimages, attention_weights, w_bb, b_bb)
    jax.block_until_ready((out, attn))
    assert out.shape == (B, F) and attn.shape == (B, V)

    # Single-tile path (tb == B).
    out_1, attn_1 = weighted_aggregate(mvimages, attention_weights, w_bb, b_bb, tb=B)
    jax.block_until_ready((out_1, attn_1))
    assert out_1.shape == (B, F) and attn_1.shape == (B, V)

    # Reference matching the kernel's mixed-precision matmul (tight check).
    out_ref, attn_ref = _reference(mvimages, attention_weights, w_bb, b_bb,
                                   bf16_matmul=True)
    assert jnp.allclose(out, out_ref, rtol=2e-2, atol=2e-3)
    assert jnp.allclose(attn, attn_ref, rtol=2e-2, atol=2e-3)
    assert jnp.allclose(out_1, out_ref, rtol=2e-2, atol=2e-3)
    assert jnp.allclose(attn_1, attn_ref, rtol=2e-2, atol=2e-3)

    # Pure-f32 module semantics (loose sanity check: bf16 matmul + approx recip).
    out_f32, attn_f32 = _reference(mvimages, attention_weights, w_bb, b_bb,
                                   bf16_matmul=False)
    assert jnp.allclose(out, out_f32, rtol=5e-2, atol=5e-3)
    assert jnp.allclose(attn, attn_f32, rtol=5e-2, atol=5e-3)

    print("KERNEL_OK")
</pallas_src>

<mosaic_0001>
module attributes {stable_mosaic.version = 11 : i64} {
  func.func @weighted_aggregate_kernel(%arg0: i32, %arg1: memref<4x8x4xf32, #tpu.memory_space<vmem>>, %arg2: memref<4x128xf32, #tpu.memory_space<vmem>>, %arg3: memref<1x128xf32, #tpu.memory_space<vmem>>, %arg4: memref<128x128xbf16, #tpu.memory_space<vmem>>, %arg5: memref<8x128xf32, #tpu.memory_space<vmem>>, %arg6: memref<8x128xf32, #tpu.memory_space<vmem>>) attributes {dimension_semantics = [#tpu.dimension_semantics<parallel>], iteration_bounds = array<i64: 2>, scalar_prefetch = 0 : i64, scratch_operands = 0 : i64, tpu.core_type = #tpu.core_type<tc>, window_params = [{transform_indices = @transform_0, window_bounds = array<i64: 4, 8, 4>}, {pipeline_mode = #tpu.pipeline_mode<synchronous>, transform_indices = @transform_1, window_bounds = array<i64: 4, 128>}, {pipeline_mode = #tpu.pipeline_mode<synchronous>, transform_indices = @transform_2, window_bounds = array<i64: 1, 128>}, {pipeline_mode = #tpu.pipeline_mode<synchronous>, transform_indices = @transform_3, window_bounds = array<i64: 128, 128>}, {transform_indices = @transform_4, window_bounds = array<i64: 8, 128>}, {transform_indices = @transform_5, window_bounds = array<i64: 8, 128>}]} {
    %c0 = arith.constant 0 : index
    %c0_0 = arith.constant 0 : index
    %0 = vector.load %arg2[%c0, %c0_0] : memref<4x128xf32, #tpu.memory_space<vmem>>, vector<4x128xf32>
    %c0_1 = arith.constant 0 : index
    %c0_2 = arith.constant 0 : index
    %1 = vector.load %arg3[%c0_1, %c0_2] : memref<1x128xf32, #tpu.memory_space<vmem>>, vector<1x128xf32>
    %c0_3 = arith.constant 0 : index
    %c0_4 = arith.constant 0 : index
    %2 = vector.load %arg4[%c0_3, %c0_4] : memref<128x128xbf16, #tpu.memory_space<vmem>>, vector<128x128xbf16>
    %c0_5 = arith.constant 0 : index
    %c0_6 = arith.constant 0 : index
    %c0_7 = arith.constant 0 : index
    %3 = vector.load %arg1[%c0_5, %c0_6, %c0_7] : memref<4x8x4xf32, #tpu.memory_space<vmem>>, vector<1x8x4xf32>
    %4 = vector.shape_cast %3 : vector<1x8x4xf32> to vector<8x4xf32>
    %cst = arith.constant dense<0.000000e+00> : vector<8x128xf32>
    %5 = tpu.matmul %4, %0, %cst {dimension_numbers = #tpu.dot_dimension_numbers<[1], [0], [0], [1], [0, 0, 1, 1], [], []>} : vector<8x4xf32>, vector<4x128xf32>, vector<8x128xf32> -> vector<8x128xf32>
    %6 = vector.broadcast %1 : vector<1x128xf32> to vector<8x128xf32>
    %7 = arith.addf %5, %6 : vector<8x128xf32>
    %8 = arith.truncf %7 : vector<8x128xf32> to vector<8x128xbf16>
    %cst_8 = arith.constant dense<0.000000e+00> : vector<8x128xf32>
    %9 = tpu.matmul %8, %2, %cst_8 {dimension_numbers = #tpu.dot_dimension_numbers<[1], [0], [0], [1], [0, 0, 1, 1], [], []>} : vector<8x128xbf16>, vector<128x128xbf16>, vector<8x128xf32> -> vector<8x128xf32>
    %c1 = arith.constant 1 : index
    %c0_9 = arith.constant 0 : index
    %c0_10 = arith.constant 0 : index
    %10 = vector.load %arg1[%c1, %c0_9, %c0_10] : memref<4x8x4xf32, #tpu.memory_space<vmem>>, vector<1x8x4xf32>
    %11 = vector.shape_cast %10 : vector<1x8x4xf32> to vector<8x4xf32>
    %cst_11 = arith.constant dense<0.000000e+00> : vector<8x128xf32>
    %12 = tpu.matmul %11, %0, %cst_11 {dimension_numbers = #tpu.dot_dimension_numbers<[1], [0], [0], [1], [0, 0, 1, 1], [], []>} : vector<8x4xf32>, vector<4x128xf32>, vector<8x128xf32> -> vector<8x128xf32>
    %13 = vector.broadcast %1 : vector<1x128xf32> to vector<8x128xf32>
    %14 = arith.addf %12, %13 : vector<8x128xf32>
    %15 = arith.truncf %14 : vector<8x128xf32> to vector<8x128xbf16>
    %cst_12 = arith.constant dense<0.000000e+00> : vector<8x128xf32>
    %16 = tpu.matmul %15, %2, %cst_12 {dimension_numbers = #tpu.dot_dimension_numbers<[1], [0], [0], [1], [0, 0, 1, 1], [], []>} : vector<8x128xbf16>, vector<128x128xbf16>, vector<8x128xf32> -> vector<8x128xf32>
    %c2 = arith.constant 2 : index
    %c0_13 = arith.constant 0 : index
    %c0_14 = arith.constant 0 : index
    %17 = vector.load %arg1[%c2, %c0_13, %c0_14] : memref<4x8x4xf32, #tpu.memory_space<vmem>>, vector<1x8x4xf32>
    %18 = vector.shape_cast %17 : vector<1x8x4xf32> to vector<8x4xf32>
    %cst_15 = arith.constant dense<0.000000e+00> : vector<8x128xf32>
    %19 = tpu.matmul %18, %0, %cst_15 {dimension_numbers = #tpu.dot_dimension_numbers<[1], [0], [0], [1], [0, 0, 1, 1], [], []>} : vector<8x4xf32>, vector<4x128xf32>, vector<8x128xf32> -> vector<8x128xf32>
    %20 = vector.broadcast %1 : vector<1x128xf32> to vector<8x128xf32>
    %21 = arith.addf %19, %20 : vector<8x128xf32>
    %22 = arith.truncf %21 : vector<8x128xf32> to vector<8x128xbf16>
    %cst_16 = arith.constant dense<0.000000e+00> : vector<8x128xf32>
    %23 = tpu.matmul %22, %2, %cst_16 {dimension_numbers = #tpu.dot_dimension_numbers<[1], [0], [0], [1], [0, 0, 1, 1], [], []>} : vector<8x128xbf16>, vector<128x128xbf16>, vector<8x128xf32> -> vector<8x128xf32>
    %c3 = arith.constant 3 : index
    %c0_17 = arith.constant 0 : index
    %c0_18 = arith.constant 0 : index
    %24 = vector.load %arg1[%c3, %c0_17, %c0_18] : memref<4x8x4xf32, #tpu.memory_space<vmem>>, vector<1x8x4xf32>
    %25 = vector.shape_cast %24 : vector<1x8x4xf32> to vector<8x4xf32>
    %cst_19 = arith.constant dense<0.000000e+00> : vector<8x128xf32>
    %26 = tpu.matmul %25, %0, %cst_19 {dimension_numbers = #tpu.dot_dimension_numbers<[1], [0], [0], [1], [0, 0, 1, 1], [], []>} : vector<8x4xf32>, vector<4x128xf32>, vector<8x128xf32> -> vector<8x128xf32>
    %27 = vector.broadcast %1 : vector<1x128xf32> to vector<8x128xf32>
    %28 = arith.addf %26, %27 : vector<8x128xf32>
    %29 = arith.truncf %28 : vector<8x128xf32> to vector<8x128xbf16>
    %cst_20 = arith.constant dense<0.000000e+00> : vector<8x128xf32>
    %30 = tpu.matmul %29, %2, %cst_20 {dimension_numbers = #tpu.dot_dimension_numbers<[1], [0], [0], [1], [0, 0, 1, 1], [], []>} : vector<8x128xbf16>, vector<128x128xbf16>, vector<8x128xf32> -> vector<8x128xf32>
    %cst_21 = arith.constant 0.000000e+00 : f32
    %31 = vector.broadcast %cst_21 : f32 to vector<8x1xf32>
    %cst_22 = arith.constant 0.000000e+00 : f32
    %32 = vector.broadcast %cst_22 : f32 to vector<8x1xf32>
    %cst_23 = arith.constant 0.000000e+00 : f32
    %33 = vector.broadcast %cst_23 : f32 to vector<8x1xf32>
    %cst_24 = arith.constant 0.000000e+00 : f32
    %34 = vector.broadcast %cst_24 : f32 to vector<8x1xf32>
    %35 = arith.mulf %9, %9 : vector<8x128xf32>
    %cst_25 = arith.constant dense<0.000000e+00> : vector<8xf32>
    %36 = vector.multi_reduction <add>, %35, %cst_25 [1] : vector<8x128xf32> to vector<8xf32>
    %37 = vector.shape_cast %36 : vector<8xf32> to vector<8x1xf32>
    %cst_26 = arith.constant 0.000000e+00 : f32
    %38 = vector.broadcast %cst_26 : f32 to vector<8x1xf32>
    %39 = arith.maximumf %37, %38 : vector<8x1xf32>
    %40 = arith.addf %31, %39 : vector<8x1xf32>
    %41 = arith.mulf %9, %16 : vector<8x128xf32>
    %cst_27 = arith.constant dense<0.000000e+00> : vector<8xf32>
    %42 = vector.multi_reduction <add>, %41, %cst_27 [1] : vector<8x128xf32> to vector<8xf32>
    %43 = vector.shape_cast %42 : vector<8xf32> to vector<8x1xf32>
    %cst_28 = arith.constant 0.000000e+00 : f32
    %44 = vector.broadcast %cst_28 : f32 to vector<8x1xf32>
    %45 = arith.maximumf %43, %44 : vector<8x1xf32>
    %46 = arith.addf %32, %45 : vector<8x1xf32>
    %47 = arith.addf %40, %45 : vector<8x1xf32>
    %48 = arith.mulf %9, %23 : vector<8x128xf32>
    %cst_29 = arith.constant dense<0.000000e+00> : vector<8xf32>
    %49 = vector.multi_reduction <add>, %48, %cst_29 [1] : vector<8x128xf32> to vector<8xf32>
    %50 = vector.shape_cast %49 : vector<8xf32> to vector<8x1xf32>
    %cst_30 = arith.constant 0.000000e+00 : f32
    %51 = vector.broadcast %cst_30 : f32 to vector<8x1xf32>
    %52 = arith.maximumf %50, %51 : vector<8x1xf32>
    %53 = arith.addf %33, %52 : vector<8x1xf32>
    %54 = arith.addf %47, %52 : vector<8x1xf32>
    %55 = arith.mulf %9, %30 : vector<8x128xf32>
    %cst_31 = arith.constant dense<0.000000e+00> : vector<8xf32>
    %56 = vector.multi_reduction <add>, %55, %cst_31 [1] : vector<8x128xf32> to vector<8xf32>
    %57 = vector.shape_cast %56 : vector<8xf32> to vector<8x1xf32>
    %cst_32 = arith.constant 0.000000e+00 : f32
    %58 = vector.broadcast %cst_32 : f32 to vector<8x1xf32>
    %59 = arith.maximumf %57, %58 : vector<8x1xf32>
    %60 = arith.addf %34, %59 : vector<8x1xf32>
    %61 = arith.addf %54, %59 : vector<8x1xf32>
    %62 = arith.mulf %16, %16 : vector<8x128xf32>
    %cst_33 = arith.constant dense<0.000000e+00> : vector<8xf32>
    %63 = vector.multi_reduction <add>, %62, %cst_33 [1] : vector<8x128xf32> to vector<8xf32>
    %64 = vector.shape_cast %63 : vector<8xf32> to vector<8x1xf32>
    %cst_34 = arith.constant 0.000000e+00 : f32
    %65 = vector.broadcast %cst_34 : f32 to vector<8x1xf32>
    %66 = arith.maximumf %64, %65 : vector<8x1xf32>
    %67 = arith.addf %46, %66 : vector<8x1xf32>
    %68 = arith.mulf %16, %23 : vector<8x128xf32>
    %cst_35 = arith.constant dense<0.000000e+00> : vector<8xf32>
    %69 = vector.multi_reduction <add>, %68, %cst_35 [1] : vector<8x128xf32> to vector<8xf32>
    %70 = vector.shape_cast %69 : vector<8xf32> to vector<8x1xf32>
    %cst_36 = arith.constant 0.000000e+00 : f32
    %71 = vector.broadcast %cst_36 : f32 to vector<8x1xf32>
    %72 = arith.maximumf %70, %71 : vector<8x1xf32>
    %73 = arith.addf %53, %72 : vector<8x1xf32>
    %74 = arith.addf %67, %72 : vector<8x1xf32>
    %75 = arith.mulf %16, %30 : vector<8x128xf32>
    %cst_37 = arith.constant dense<0.000000e+00> : vector<8xf32>
    %76 = vector.multi_reduction <add>, %75, %cst_37 [1] : vector<8x128xf32> to vector<8xf32>
    %77 = vector.shape_cast %76 : vector<8xf32> to vector<8x1xf32>
    %cst_38 = arith.constant 0.000000e+00 : f32
    %78 = vector.broadcast %cst_38 : f32 to vector<8x1xf32>
    %79 = arith.maximumf %77, %78 : vector<8x1xf32>
    %80 = arith.addf %60, %79 : vector<8x1xf32>
    %81 = arith.addf %74, %79 : vector<8x1xf32>
    %82 = arith.mulf %23, %23 : vector<8x128xf32>
    %cst_39 = arith.constant dense<0.000000e+00> : vector<8xf32>
    %83 = vector.multi_reduction <add>, %82, %cst_39 [1] : vector<8x128xf32> to vector<8xf32>
    %84 = vector.shape_cast %83 : vector<8xf32> to vector<8x1xf32>
    %cst_40 = arith.constant 0.000000e+00 : f32
    %85 = vector.broadcast %cst_40 : f32 to vector<8x1xf32>
    %86 = arith.maximumf %84, %85 : vector<8x1xf32>
    %87 = arith.addf %73, %86 : vector<8x1xf32>
    %88 = arith.mulf %23, %30 : vector<8x128xf32>
    %cst_41 = arith.constant dense<0.000000e+00> : vector<8xf32>
    %89 = vector.multi_reduction <add>, %88, %cst_41 [1] : vector<8x128xf32> to vector<8xf32>
    %90 = vector.shape_cast %89 : vector<8xf32> to vector<8x1xf32>
    %cst_42 = arith.constant 0.000000e+00 : f32
    %91 = vector.broadcast %cst_42 : f32 to vector<8x1xf32>
    %92 = arith.maximumf %90, %91 : vector<8x1xf32>
    %93 = arith.addf %80, %92 : vector<8x1xf32>
    %94 = arith.addf %87, %92 : vector<8x1xf32>
    %95 = arith.mulf %30, %30 : vector<8x128xf32>
    %cst_43 = arith.constant dense<0.000000e+00> : vector<8xf32>
    %96 = vector.multi_reduction <add>, %95, %cst_43 [1] : vector<8x128xf32> to vector<8xf32>
    %97 = vector.shape_cast %96 : vector<8xf32> to vector<8x1xf32>
    %cst_44 = arith.constant 0.000000e+00 : f32
    %98 = vector.broadcast %cst_44 : f32 to vector<8x1xf32>
    %99 = arith.maximumf %97, %98 : vector<8x1xf32>
    %100 = arith.addf %93, %99 : vector<8x1xf32>
    %101 = arith.addf %61, %81 : vector<8x1xf32>
    %102 = arith.addf %101, %94 : vector<8x1xf32>
    %103 = arith.addf %102, %100 : vector<8x1xf32>
    %cst_45 = arith.constant 9.99999996E-13 : f32
    %104 = vector.broadcast %cst_45 : f32 to vector<8x1xf32>
    %105 = arith.addf %103, %104 : vector<8x1xf32>
    %106 = tpu.reciprocal %105 {approx = true} : vector<8x1xf32> -> vector<8x1xf32>
    %cst_46 = arith.constant 0.000000e+00 : f32
    %107 = vector.broadcast %cst_46 : f32 to vector<8x128xf32>
    %108 = arith.mulf %61, %106 : vector<8x1xf32>
    %109 = vector.broadcast %108 : vector<8x1xf32> to vector<8x128xf32>
    %110 = arith.mulf %7, %109 : vector<8x128xf32>
    %111 = arith.addf %107, %110 : vector<8x128xf32>
    %112 = arith.mulf %81, %106 : vector<8x1xf32>
    %113 = vector.broadcast %112 : vector<8x1xf32> to vector<8x128xf32>
    %114 = arith.mulf %14, %113 : vector<8x128xf32>
    %115 = arith.addf %111, %114 : vector<8x128xf32>
    %116 = arith.mulf %94, %106 : vector<8x1xf32>
    %117 = vector.broadcast %116 : vector<8x1xf32> to vector<8x128xf32>
    %118 = arith.mulf %21, %117 : vector<8x128xf32>
    %119 = arith.addf %115, %118 : vector<8x128xf32>
    %120 = arith.mulf %100, %106 : vector<8x1xf32>
    %121 = vector.broadcast %120 : vector<8x1xf32> to vector<8x128xf32>
    %122 = arith.mulf %28, %121 : vector<8x128xf32>
    %123 = arith.addf %119, %122 : vector<8x128xf32>
    %c0_47 = arith.constant 0 : index
    %c0_48 = arith.constant 0 : index
    %124 = vector.load %arg5[%c0_47, %c0_48] : memref<8x128xf32, #tpu.memory_space<vmem>>, vector<8x128xf32>
    tpu.vector_store %arg5[%c0_47, %c0_48], %123 {strides = array<i32>} : memref<8x128xf32, #tpu.memory_space<vmem>>, vector<8x128xf32>,
    %cst_49 = arith.constant 0.000000e+00 : f32
    %125 = vector.broadcast %cst_49 : f32 to vector<8x124xf32>
    %126 = tpu.concatenate %108, %112, %116, %120, %125 in 1 : vector<8x1xf32>, vector<8x1xf32>, vector<8x1xf32>, vector<8x1xf32>, vector<8x124xf32> -> vector<8x128xf32>
    %c0_50 = arith.constant 0 : index
    %c0_51 = arith.constant 0 : index
    %127 = vector.load %arg6[%c0_50, %c0_51] : memref<8x128xf32, #tpu.memory_space<vmem>>, vector<8x128xf32>
    tpu.vector_store %arg6[%c0_50, %c0_51], %126 {strides = array<i32>} : memref<8x128xf32, #tpu.memory_space<vmem>>, vector<8x128xf32>,
    return
  }
  func.func @transform_0(%arg0: i32) -> (i32, i32, i32) {
    %c0_i32 = arith.constant 0 : i32
    %c0_i32_0 = arith.constant 0 : i32
    %c0_i32_1 = arith.constant 0 : i32
    return %c0_i32, %arg0, %c0_i32_0 : i32, i32, i32
  }
  func.func @transform_1(%arg0: i32) -> (i32, i32) {
    %c0_i32 = arith.constant 0 : i32
    %c0_i32_0 = arith.constant 0 : i32
    %c0_i32_1 = arith.constant 0 : i32
    return %c0_i32, %c0_i32_0 : i32, i32
  }
  func.func @transform_2(%arg0: i32) -> (i32, i32) {
    %c0_i32 = arith.constant 0 : i32
    %c0_i32_0 = arith.constant 0 : i32
    %c0_i32_1 = arith.constant 0 : i32
    return %c0_i32, %c0_i32_0 : i32, i32
  }
  func.func @transform_3(%arg0: i32) -> (i32, i32) {
    %c0_i32 = arith.constant 0 : i32
    %c0_i32_0 = arith.constant 0 : i32
    %c0_i32_1 = arith.constant 0 : i32
    return %c0_i32, %c0_i32_0 : i32, i32
  }
  func.func @transform_4(%arg0: i32) -> (i32, i32) {
    %c0_i32 = arith.constant 0 : i32
    %c0_i32_0 = arith.constant 0 : i32
    return %arg0, %c0_i32 : i32, i32
  }
  func.func @transform_5(%arg0: i32) -> (i32, i32) {
    %c0_i32 = arith.constant 0 : i32
    %c0_i32_0 = arith.constant 0 : i32
    return %arg0, %c0_i32 : i32, i32
  }
}

</mosaic_0001>

<bundles_post_ra>
// kernel: weighted_aggregate.1
= control target key start
LH: loop header
LB: loop body
LE: loop exit
PB: predicated region body
PF: predicated region fallthrough
CT: control target
= control target key end

     0   :  { %11 = vsyncpa [#allocation4], 0  ;;  %s1069_s0 = inlined_call_operand.vmem [shape: f32[4,16,4], index: 0, kind: input, shape index: {}]   ;;  %s1070_s1 = inlined_call_operand.vmem [shape: f32[4,128], index: 1, kind: input, shape index: {}]   ;;  %s1071_s2 = inlined_call_operand.vmem [shape: f32[1,128], index: 2, kind: input, shape index: {}]   ;;  %s1072_s3 = inlined_call_operand.vmem [shape: bf16[128,128], index: 3, kind: input, shape index: {}]   ;;  %s1073_s4 = inlined_call_operand.hbm [shape: f32[16,128], index: 4, kind: output, shape index: {0}]   ;;  %s1074_s5 = inlined_call_operand.vmem [shape: f32[16,128], index: 5, kind: output, shape index: {1}]  }
   0x1   :  { %13 = vsyncpa [#allocation4 + $0x1], 0  ;;  %s904_s18 = smov 0   ;;  %s906_s19 = smov 0  }
   0x2   :  { %s908_s20 = smov 0   ;;  %s910_s21 = smov 0  }
   0x3 LB: > { %s925_s22 = sadd.s32 4294967295, %s872_s21   ;;  %s704_s23 = sadd.s32 4294967294, %s872_s21   ;;  %s872_s21 = sphi %s910_s21, %s1080_s21   ;;  %s868_s20 = sphi %s908_s20, %s1079_s20   ;;  %s864_s19 = sphi %s906_s19, %s1078_s19   ;;  %s860_s18 = sphi %s904_s18, %s1077_s18  }
   0x4   : > { %s929_s24 = sadd.s32 1, %s872_s21   ;;  %s26_s25 = sadd.s32 1, %s868_s20 }
   0x5   : > { %s23_s26 = ssub.s32 %s872_s21, %s929_s24  ;;  %p33_p0 = scmp.ne.s32.totalorder %s868_s20, %s864_s19 }
   0x6   : > { %p24_p1 = scmp.eq.s32.totalorder %s23_s26, 0  ;;  %p34_p2 = scmp.eq.s32.totalorder %s872_s21, 0 }
   0x7   : > { %p126_p3 = scmp.eq.s32.totalorder %s925_s22, 1  ;;  %p131_p4 = scmp.ne.s32.totalorder %s864_s19, %s860_s18 }
   0x8   : > { %s941_s27 = scalar_select %p24_p1, %s868_s20, %s26_s25  }
   0x9   : > { %p35_p5 = por %p34_p2, %p33_p0  ;;  %p943_p6 = por %p126_p3, %p33_p0 }
   0xa   : > { %p132_p7 = scmp.eq.s32.totalorder %s704_s23, 1  ;;  %p706_p9 = scmp.ge.s32.totalorder %s872_s21, 2 }
   0xc   : > { %p947_p8 = por %p132_p7, %p131_p4  ;;  %183 = sbr.rel (%p706_p9) target bundleno = 25 (0x19), region = 28 }
  0x11   : > { %186 = sbr.rel (!%p35_p5) target bundleno = 25 (0x19), region = 32  ;;  %s188_s30 = sand.u32 (%p35_p5), 1, %s868_s20  }
  0x12   : > { %s708_s6 = sshll.u32 (%p35_p5), %s872_s21, 3  ;;  %s707_s7 = sshll.u32 (%p35_p5), %s188_s30, 5 }
  0x13   : > { %s192_s10 = scalar_lea.vmem (%p35_p5), %s1069_s0, %s708_s6  ;;  %s190_s11 = scalar_lea.vmem (%p35_p5), [#allocation2], %s707_s7 }
  0x14   : > { %v227_v0 = vld [vmem:[%s192_s10] sm:$0xff] (%p35_p5)  ;;  %v229_v1 = vld [vmem:[%s192_s10 + $0x10] sm:$0xff] (%p35_p5) }
  0x15   : > { %v231_v2 = vld [vmem:[%s192_s10 + $0x20] sm:$0xff] (%p35_p5)  ;;  %228 = vst [vmem:[%s190_s11] sm:$0xff] (%p35_p5), %v227_v0  ;;  %v233_v3 = vld [vmem:[%s192_s10 + $0x30] sm:$0xff] (%p35_p5) }
  0x16   : > { %230 = vst [vmem:[%s190_s11 + $0x8] sm:$0xff] %v229_v1 }
  0x17   : > { %232 = vst [vmem:[%s190_s11 + $0x10] sm:$0xff] %v231_v2 }
  0x18   : > { %234 = vst [vmem:[%s190_s11 + $0x18] sm:$0xff] %v233_v3 }
  0x19 PF: > { %p709_p10 = scmp.ge.s32.totalorder %s872_s21, 1  ;;  %p239_p11 = scmp.lt.s32.totalorder %s872_s21, 3 }
  0x1b   : > { %p240_p12 = pnand %p709_p10, %p239_p11 }
  0x1c   : > { %s965_s14 = sand.u32 (!%p240_p12), 1, %s864_s19   ;;  %p277_p13 = scmp.lt.s32.totalorder (!%p240_p12), %s925_s22, 1 }
  0x1d   : > { %243 = sbr.rel (%p240_p12) target bundleno = 615 (0x267), region = 70  ;;  %s710_s17 = sshll.u32 (!%p240_p12), %s965_s14, 5 }
  0x1e   : > { %s977_s26 = scalar_lea.vmem (!%p240_p12), [#allocation2], %s710_s17  ;;  %s711_s30 = sshll.u32 (!%p240_p12), %s965_s14, 3 }
  0x1f   : > { %s757_s6 = sshll.u32 (!%p240_p12), %s925_s22, 3  ;;  %s270_s13 = scalar_lea.vmem (!%p240_p12), [#allocation3], %s711_s30 }
  0x20   : > { %s607_s10 = scalar_lea.hbm (!%p240_p12), %s1073_s4, %s757_s6  ;;  %s609_s15 = sshll.u32 (!%p240_p12), %s270_s13, 4  ;;  %s610_s15 = int_to_ptr.vmem [resolvable:$true] %s609_s15 }
  0x21   : > { %s611_s16 = sshll.u32 (!%p240_p12), %s607_s10, 4  ;;  %s593_s17 = scalar_lea.sflag (!%p240_p12), [#allocation4], %s965_s14  ;;  %s612_s16 = int_to_ptr.hbm [resolvable:$true] %s611_s16 }
  0x22   : > { %v281_v4 = vld [vmem:[%s1070_s1] sm:$0xf]  ;;  %vm307_vm0 = vcmask 1043456   ;;  %v767_v5 = vld [vmem:[%s1072_s3 + $0x38] sm:$0xff]  ;;  %vm303_vm1 = vcmask 31744   ;;  %v766_v6 = vld [vmem:[%s1072_s3 + $0x30] sm:$0xff] }
  0x23   : > { %748 = vmatpush.msk.msra.mxu2 %vm307_vm0, %v281_v4  ;;  %713 = vmatpush.msk.msra.mxu1 %vm307_vm0, %v281_v4  ;;  %v747_v7 = vld [vmem:[%s977_s26 + $0x8] sm:$0xff]  ;;  %v299_v8 = vld [vmem:[%s977_s26] sm:$0xff]  ;;  %v753_v9 = vld [vmem:[%s977_s26 + $0x18] sm:$0xff]  ;;  %vm584_vm2 = vcmask 7168   ;;  %vm586_vm3 = vcmask 15360   ;;  %vm588_vm4 = vcmask 23552  }
  0x24   : > { %754 = vmatpush.msk.msra.mxu0 %vm307_vm0, %v281_v4  ;;  %419 = vmatpush.bf16.msra.mxu3 %v767_v5  ;;  %v765_v10 = vld [vmem:[%s1072_s3 + $0x28] sm:$0xff]  ;;  %v764_v11 = vld [vmem:[%s1072_s3 + $0x20] sm:$0xff]  ;;  %v763_v12 = vld [vmem:[%s1072_s3 + $0x18] sm:$0xff]  ;;  %s824_s23 = sshra.s32 %s612_s16, 4  ;;  %s830_s6 = scalar_lea.hbm %s1073_s4, 16  ;;  %s825_s23 = int_to_ptr.hbm [resolvable:$true] %s824_s23 }
  0x25   : > { %380 = vmatpush.bf16.msrb.mxu1 %v767_v5  ;;  %749 = vmatmul.msk.f32.vlgmr.msra.gmra.mxu2 %vm303_vm1, %v747_v7  ;;  %v762_v13 = vld [vmem:[%s1072_s3 + $0x10] sm:$0xff]  ;;  %v761_v14 = vld [vmem:[%s1072_s3 + $0x8] sm:$0xff]  ;;  %v760_v15 = vld [vmem:[%s1072_s3] sm:$0xff]  ;;  %s826_s25 = scalar_lea.hbm %s825_s23, 8  ;;  %p831_p3 = scmp.lt.s32.totalorder %s825_s23, %s1073_s4 }
  0x26   : > { %497 = vmatpush.bf16.msrb.mxu0 %v767_v5  ;;  %714 = vmatmul.msk.f32.vlgmr.msra.gmra.mxu1 %vm303_vm1, %v299_v8  ;;  %v807_v16 = vld [vmem:[%s1071_s2] ss:$0 sm:$0xff]  ;;  %v750_v26 = vld [vmem:[%s977_s26 + $0x10] sm:$0xff]  ;;  %s278_s26 = scalar_select %p277_p13, %s925_s22, 1 }
  0x27   : > { %755 = vmatmul.msk.f32.vlgmr.msra.gmra.mxu0 %vm303_vm1, %v753_v9  ;;  %458 = vmatpush.bf16.msrb.mxu2 %v767_v5  ;;  %p827_p0 = scmp.ne.s32.totalorder %s825_s23, %s826_s25  ;;  %p832_p4 = scmp.lt.s32.totalorder %s830_s6, %s826_s25 }
  0x28   : > { %420 = vmatpush.bf16.msra.mxu3 %v766_v6  ;;  %s712_s7 = sshll.u32 %s278_s26, 3 }
  0x29   : > { %381 = vmatpush.bf16.msrb.mxu1 %v766_v6  ;;  %s280_s22 = scalar_lea.vmem %s1074_s5, %s712_s7  ;;  %p828_p1 = pnand %p827_p0, %p943_p6 }
  0x2a   : > { %498 = vmatpush.bf16.msrb.mxu0 %v766_v6  ;;  %p833_p5 = por %p832_p4, %p831_p3 }
  0x2b   : > { %459 = vmatpush.bf16.msrb.mxu2 %v766_v6  ;;  %p829_p2 = pneg %p828_p1 }
  0x2c   : > { %421 = vmatpush.bf16.msra.mxu3 %v765_v10 }
  0x2d   : > { %382 = vmatpush.bf16.msrb.mxu1 %v765_v10  ;;  %p834_p7 = pnand %p833_p5, %p829_p2 }
  0x2e   : > { %499 = vmatpush.bf16.msrb.mxu0 %v765_v10 }
  0x2f   : > { %460 = vmatpush.bf16.msrb.mxu2 %v765_v10 }
  0x30   : > { %422 = vmatpush.bf16.msra.mxu3 %v764_v11 }
  0x31   : > { %383 = vmatpush.bf16.msrb.mxu1 %v764_v11 }
  0x32   : > { %500 = vmatpush.bf16.msrb.mxu0 %v764_v11 }
  0x33   : > { %461 = vmatpush.bf16.msrb.mxu2 %v764_v11 }
  0x34   : > { %423 = vmatpush.bf16.msra.mxu3 %v763_v12 }
  0x35   : > { %384 = vmatpush.bf16.msrb.mxu1 %v763_v12 }
  0x36   : > { %501 = vmatpush.bf16.msrb.mxu0 %v763_v12 }
  0x37   : > { %462 = vmatpush.bf16.msrb.mxu2 %v763_v12 }
  0x38   : > { %424 = vmatpush.bf16.msra.mxu3 %v762_v13 }
  0x39   : > { %385 = vmatpush.bf16.msrb.mxu1 %v762_v13 }
  0x3a   : > { %502 = vmatpush.bf16.msrb.mxu0 %v762_v13 }
  0x3b   : > { %463 = vmatpush.bf16.msrb.mxu2 %v762_v13 }
  0x3c   : > { %425 = vmatpush.bf16.msra.mxu3 %v761_v14 }
  0x3d   : > { %386 = vmatpush.bf16.msrb.mxu1 %v761_v14 }
  0x3e   : > { %503 = vmatpush.bf16.msrb.mxu0 %v761_v14 }
  0x3f   : > { %464 = vmatpush.bf16.msrb.mxu2 %v761_v14 }
  0x40   : > { %426 = vmatpush.bf16.msra.mxu3 %v760_v15 }
  0x41   : > { %387 = vmatpush.bf16.msrb.mxu1 %v760_v15 }
  0x42   : > { %504 = vmatpush.bf16.msrb.mxu0 %v760_v15 }
  0x43   : > { %465 = vmatpush.bf16.msrb.mxu2 %v760_v15 }
  0x44   : > { %751 = vmatpush.msk.msrb.mxu3 %vm307_vm0, %v281_v4 }
  0xa3   : > { %v328_v17 = vpop.f32.mrf.mxu1 }
  0xa4   : > { %v1007_v18 = vadd.f32 %v807_v16, %v328_v17  ;;  %v493_v19 = vpop.f32.mrf.mxu0 }
  0xa5   : > { %v1009_v20 = vadd.f32 %v807_v16, %v493_v19 }
  0xa6   : > { %v331_v21 = vpack.c.bf16 %v1007_v18, %v1007_v18 }
  0xa7   : > { %v496_v22 = vpack.c.bf16 %v1009_v20, %v1009_v20 }
  0xa8   : > { %388 = vmatmul.bf16.vlgmr.msrb.gmra.mxu1 %v331_v21  ;;  %v415_v23 = vpop.f32.mrf.mxu2 }
  0xa9   : > { %505 = vmatmul.bf16.vlgmr.msrb.gmra.mxu0 %v496_v22  ;;  %v1015_v24 = vadd.f32 %v807_v16, %v415_v23 }
  0xab   : > { %v418_v25 = vpack.c.bf16 %v1015_v24, %v1015_v24 }
  0xad   : > { %427 = vmatmul.bf16.vlgmr.msra.gmra.mxu3 %v418_v25 }
  0xbd   : > { %752 = vmatmul.msk.f32.vlgmr.msrb.gmra.mxu3 %vm303_vm1, %v750_v26 }
 0x125   : > { %v389_v27 = vpop.f32.mrf.mxu1 }
 0x126   : > { %v510_v28 = vmul.f32 %v389_v27, %v389_v27  ;;  %v506_v29 = vpop.f32.mrf.mxu0 }
 0x127   : > { %v527_v30 = vmul.f32 %v506_v29, %v389_v27  ;;  %v561_v41 = vmul.f32 %v506_v29, %v506_v29 }
 0x128   : > { %511 = vadd.xlane.f32.xlu0 %v510_v28 }
 0x129   : > { %528 = vadd.xlane.f32.xlu2 %v527_v30 }
 0x12d   : > { %v391_v31 = vpop.f32.mrf.mxu1 }
 0x12e   : > { %v508_v32 = vpop.f32.mrf.mxu0 }
 0x130   : > { %v428_v33 = vpop.f32.mrf.mxu3 }
 0x131   : > { %v533_v34 = vmul.f32 %v428_v33, %v428_v33  ;;  %v515_v35 = vmul.f32 %v428_v33, %v389_v27  ;;  %v544_v37 = vmul.f32 %v506_v29, %v428_v33 }
 0x133   : > { %534 = vadd.xlane.f32.xlu1 %v533_v34  ;;  %516 = vadd.xlane.f32.xlu0 %v515_v35 }
 0x138   : > { %v430_v36 = vpop.f32.mrf.mxu3 }
 0x13b   : > { %545 = vadd.xlane.f32.xlu0 %v544_v37 }
 0x140   : > { %v454_v38 = vpop.f32.mrf.mxu3 }
 0x141   : > { %v1021_v39 = vadd.f32 %v807_v16, %v454_v38 }
 0x143   : > { %v457_v40 = vpack.c.bf16 %v1021_v39, %v1021_v39  ;;  %562 = vadd.xlane.f32.xlu0 %v561_v41 }
 0x145   : > { %466 = vmatmul.bf16.vlgmr.msrb.gmra.mxu2 %v457_v40 }
 0x19b   : > { %v512_v48 = vpop.xlane.xlu0 %511 }
 0x19c   : > { %v529_v51 = vpop.xlane.xlu2 %528  ;;  %v513_v52 = vmax.f32 %v512_v48, 0.0 }
 0x19d   : > { %v530_v62 = vmax.f32 %v529_v51, 0.0 }
 0x1a6   : > { %v517_v49 = vpop.xlane.xlu0 %516  ;;  %v535_v50 = vpop.xlane.xlu1 %534 }
 0x1a7   : > { %v536_v53 = vmax.f32 %v535_v50, 0.0  ;;  %v518_v54 = vmax.f32 %v517_v49, 0.0 }
 0x1a9   : > { %v520_v60 = vadd.f32 %v518_v54, %v513_v52  ;;  %v537_v61 = vadd.f32 %v536_v53, %v518_v54 }
 0x1ae   : > { %v546_v57 = vpop.xlane.xlu0 %545 }
 0x1af   : > { %v547_v63 = vmax.f32 %v546_v57, 0.0 }
 0x1b1   : > { %v548_v2 = vadd.f32 %v547_v63, %v530_v62 }
 0x1b6   : > { %v563_v10 = vpop.xlane.xlu0 %562 }
 0x1b7   : > { %v564_v13 = vmax.f32 %v563_v10, 0.0 }
 0x1c8   : > { %v467_v42 = vpop.f32.mrf.mxu2 }
 0x1c9   : > { %v538_v43 = vmul.f32 %v467_v42, %v428_v33  ;;  %v521_v44 = vmul.f32 %v467_v42, %v389_v27  ;;  %v555_v46 = vmul.f32 %v506_v29, %v467_v42  ;;  %v550_v47 = vmul.f32 %v467_v42, %v467_v42 }
 0x1cb   : > { %539 = vadd.xlane.f32.xlu2 %v538_v43  ;;  %522 = vadd.xlane.f32.xlu1 %v521_v44 }
 0x1d0   : > { %v469_v45 = vpop.f32.mrf.mxu2 }
 0x1d3   : > { %556 = vadd.xlane.f32.xlu2 %v555_v46  ;;  %551 = vadd.xlane.f32.xlu1 %v550_v47 }
 0x23e   : > { %v540_v55 = vpop.xlane.xlu2 %539  ;;  %v523_v56 = vpop.xlane.xlu1 %522 }
 0x23f   : > { %v541_v58 = vmax.f32 %v540_v55, 0.0  ;;  %v524_v59 = vmax.f32 %v523_v56, 0.0 }
 0x241   : > { %v543_v0 = vadd.f32 %v541_v58, %v537_v61  ;;  %v526_v1 = vadd.f32 %v524_v59, %v520_v60  ;;  %v542_v3 = vadd.f32 %v541_v58, %v524_v59 }
 0x243   : > { %v549_v6 = vadd.f32 %v547_v63, %v543_v0  ;;  %v532_v7 = vadd.f32 %v530_v62, %v526_v1 }
 0x245   : > { %v566_v14 = vadd.f32 %v549_v6, %v532_v7 }
 0x246   : > { %v557_v4 = vpop.xlane.xlu2 %556  ;;  %v552_v5 = vpop.xlane.xlu1 %551 }
 0x247   : > { %v558_v8 = vmax.f32 %v557_v4, 0.0  ;;  %v553_v9 = vmax.f32 %v552_v5, 0.0 }
 0x249   : > { %v559_v11 = vadd.f32 %v558_v8, %v548_v2  ;;  %v554_v12 = vadd.f32 %v553_v9, %v542_v3 }
 0x24b   : > { %v560_v15 = vadd.f32 %v558_v8, %v554_v12  ;;  %v565_v16 = vadd.f32 %v564_v13, %v559_v11 }
 0x24d   : > { %v567_v17 = vadd.f32 %v566_v14, %v560_v15 }
 0x24f   : > { %v568_v19 = vadd.f32 %v567_v17, %v565_v16 }
 0x251   : > { %v569_v21 = vadd.f32 1e-12, %v568_v19 }
 0x253   : > { %808 = vrcp.f32 %v569_v21 }
 0x259   : > { %v809_v22 = vpop.eup %808 }
 0x25a   : > { %v571_v23 = vmul.f32 %v809_v22, %v532_v7  ;;  %v574_v25 = vmul.f32 %v809_v22, %v549_v6  ;;  %v577_v26 = vmul.f32 %v809_v22, %v560_v15  ;;  %v580_v30 = vmul.f32 %v809_v22, %v565_v16 }
 0x25c   : > { %v585_v27 = vsel %vm584_vm2, %v571_v23, %v574_v25  ;;  %v572_v28 = vmul.f32 %v571_v23, %v1007_v18  ;;  %v575_v29 = vmul.f32 %v574_v25, %v1015_v24  ;;  %v578_v32 = vmul.f32 %v577_v26, %v1021_v39 }
 0x25d   : > { %v587_v31 = vsel %vm586_vm3, %v585_v27, %v577_v26  ;;  %v581_v24 = vmul.f32 %v580_v30, %v1009_v20 }
 0x25e   : > { %v576_v33 = vadd.f32 %v575_v29, %v572_v28  ;;  %v589_v34 = vsel %vm588_vm4, %v587_v31, %v580_v30 }
 0x25f   : > { %v590_v35 = vsel %vm303_vm1, %v589_v34, 0.0 }
 0x260   : > { %v579_v18 = vadd.f32 %v578_v32, %v576_v33  ;;  %591 = vst [vmem:[%s280_s22] sm:$0xff] %v590_v35 }
 0x262   : > { %v582_v36 = vadd.f32 %v581_v24, %v579_v18 }
 0x264   : > { %583 = vst [vmem:[%s270_s13] sm:$0xff] %v582_v36 }
 0x265   : > { %837 = shalt.err (!%p834_p7)
}
 0x266   : > { %768 = dma.vmem_to_hbm [thread:$0]  (%p943_p6), %s610_s15, 128, %s612_s16, %s593_s17  }
 0x267 PF: > { %s626_s14 = sand.u32 1, %s860_s18   ;;  %p771_p10 = pnand %p706_p9, %p947_p8 }
 0x268   : > { %s627_s9 = scalar_lea.sflag [#allocation4], %s626_s14 }
 0x269   : > { %p772_p11 = pneg %p771_p10 }
 0x26b   : > { %855 = dma.done.wait (%p772_p11), %s627_s9, 128  }
 0x26c   : > { %857 = vsyncadd (%p772_p11), %s627_s9, 4294967168  ;;  %p16_p12 = scmp.ge.s32.totalorder %s929_s24, 4   ;;  %s1077_s18 = smov %s864_s19 }
 0x26d   : > { %s1078_s19 = smov %s868_s20  ;;  %s1079_s20 = smov %s941_s27 }
 0x26e   : > { %s1080_s21 = smov %s929_s24  ;;  %18 = sbr.rel (!%p16_p12) target bundleno = 3 (0x3), region = 129 }
 0x273   :  { %640 = vsyncpa [#allocation4], 1 }
 0x274   :  { %642 = vsyncpa [#allocation4 + $0x1], 1 }

</bundles_post_ra>
